<compile_context>
chip_gen: v6e
topology: v6e:2x2x1
jax: 0.10.0
libtpu: 0.0.40
codegen_flags: <defaults>
</compile_context>

<pallas_src>
import functools
import numpy as np

import jax
import jax.numpy as jnp
from jax.experimental import pallas as pl
from jax.experimental.pallas import tpu as pltpu


# -----------------------------------------------------------------------------
# Helpers
# -----------------------------------------------------------------------------
def _round_up(x, m):
    return ((x + m - 1) // m) * m


def _vmem_limit_bytes(default=48 * 1024 * 1024):
    """~75% of physical per-core VMEM; safe 48 MiB fallback (fits v5e/v6e/v7x)."""
    try:
        info = pltpu.get_tpu_info()
        cap = getattr(info, "vmem_capacity_bytes", None)
        if cap:
            return int(cap) * 3 // 4
    except Exception:
        pass
    return default


# -----------------------------------------------------------------------------
# LayerNorm kernel: channels on sublanes, pixels on lanes, NO wrapper transposes
# -----------------------------------------------------------------------------
def _layernorm_kernel(x_ref, g_ref, b_ref, o_ref):
    x = x_ref[0].astype(jnp.float32)                      # (C, bm)
    mean = jnp.mean(x, axis=0, keepdims=True)             # (1, bm)
    var = jnp.mean((x - mean) ** 2, axis=0, keepdims=True)
    y = (x - mean) * jax.lax.rsqrt(var + 1e-5)
    o_ref[0] = (y * g_ref[...] + b_ref[...]).astype(o_ref.dtype)


def layernorm_pallas(x, gamma, beta, bm=2048):
    """x: (N, C, M) with M = H*W pixels on lanes.  Returns (N, C, M) f32."""
    N, C, M = x.shape
    bm = min(bm, _round_up(M, 128))
    Mp = _round_up(M, bm)
    if Mp != M:
        x = jnp.pad(x, ((0, 0), (0, 0), (0, Mp - M)))
    out = pl.pallas_call(
        _layernorm_kernel,
        out_shape=jax.ShapeDtypeStruct((N, C, Mp), jnp.float32),
        grid=(N, Mp // bm),
        in_specs=[
            pl.BlockSpec((1, C, bm), lambda n, j: (n, 0, j)),
            pl.BlockSpec((C, 1), lambda n, j: (0, 0)),
            pl.BlockSpec((C, 1), lambda n, j: (0, 0)),
        ],
        out_specs=pl.BlockSpec((1, C, bm), lambda n, j: (n, 0, j)),
        compiler_params=pltpu.CompilerParams(
            dimension_semantics=("parallel", "parallel")),
    )(x, gamma.reshape(C, 1), beta.reshape(C, 1))
    return out[:, :, :M]


# -----------------------------------------------------------------------------
# Cost-volume kernel: single batched call, ego read in-kernel (no HBM gather)
# -----------------------------------------------------------------------------
def _cost_kernel(idx_ref, all_ref, prob_ref, o_ref, *, thre):
    i = idx_ref[pl.program_id(0)]                          # local ego index (SMEM)
    allf = all_ref[0]                                      # (Lm, C, t)
    ego = all_ref[0, pl.ds(i, 1)]                          # (1, C, t) diagonal row
    mask = (prob_ref[0] > thre).astype(jnp.float32)        # (Lm, 1, t)
    prod = ego * allf * mask                               # mask BEFORE the sum
    n, c, t = prod.shape
    o_ref[...] = jnp.sum(prod.reshape(n * c, t), axis=0)[None, None, :]


def _pick_hw_tile(HWp, target=1024):
    t = min(HWp, (target // 128) * 128)
    while HWp % t != 0:
        t -= 128
    return t


def cost_volume_batch_pallas(warp_feat, warp_prob, ego_idx, H, W, thre=0.1):
    # warp_feat: (G, Lm, C, HW)  warp_prob: (G, Lm, 1, HW)  ego_idx: (G,) int32
    G, Lm, C, HW = warp_feat.shape
    HWp = _round_up(HW, 128)
    if HWp != HW:
        warp_feat = jnp.pad(warp_feat, ((0, 0), (0, 0), (0, 0), (0, HWp - HW)))
        warp_prob = jnp.pad(warp_prob, ((0, 0), (0, 0), (0, 0), (0, HWp - HW)))
    t_hw = _pick_hw_tile(HWp)
    out = pl.pallas_call(
        functools.partial(_cost_kernel, thre=thre),
        out_shape=jax.ShapeDtypeStruct((G, 1, HWp), jnp.float32),
        grid_spec=pltpu.PrefetchScalarGridSpec(
            num_scalar_prefetch=1,
            grid=(G, HWp // t_hw),
            in_specs=[
                pl.BlockSpec((1, Lm, C, t_hw), lambda g, j, idx: (g, 0, 0, j)),
                pl.BlockSpec((1, Lm, 1, t_hw), lambda g, j, idx: (g, 0, 0, j)),
            ],
            out_specs=pl.BlockSpec((1, 1, t_hw), lambda g, j, idx: (g, 0, j)),
        ),
        compiler_params=pltpu.CompilerParams(
            dimension_semantics=("parallel", "parallel"),
            vmem_limit_bytes=_vmem_limit_bytes()),
    )(ego_idx, warp_feat, warp_prob)
    return out[:, :, :HW].reshape(G, 1, H, W)


# -----------------------------------------------------------------------------
# Fused depth_net kernel: conv1(7x7)+ReLU -> VMEM -> conv2(3x3)+sigmoid
# -----------------------------------------------------------------------------
def _depth_net_kernel(x_ref, mask_ref, w1_ref, b1_ref, w2_ref, b2_ref,
                      o_ref, h1_ref, *, Wp, L, Lext, P0, L1):
    x = x_ref[0]                                           # (2, Lp_in) f32
    mask = mask_ref[...]                                   # (1, Lext)

    # conv1: the 7 kx taps of each ky are grouped into one (32,14)x(14,Lext)
    # MXU matmul (f32), so 7 pushes / 6 accumulator adds instead of 49 / 48.
    acc = jnp.zeros((32, Lext), dtype=jnp.float32)
    for ky in range(7):
        base = ky * Wp
        slab = jnp.concatenate(
            [x[:, base + kx: base + kx + Lext] for kx in range(7)], axis=0)  # (14, Lext)
        acc = acc + jnp.dot(w1_ref[ky], slab, preferred_element_type=jnp.float32)
    h1 = jnp.maximum(acc + b1_ref[...], 0.0) * mask        # bias+ReLU, kill wrap/tail cols

    # h1 stays in a zero-bordered VMEM scratch (never written to HBM).
    # Only the small borders are zero-filled; the interior store is 128-aligned.
    h1_ref[:, 0:P0] = jnp.zeros((32, P0), jnp.float32)
    h1_ref[:, P0 + Lext:L1] = jnp.zeros((32, L1 - P0 - Lext), jnp.float32)
    h1_ref[:, P0:P0 + Lext] = h1

    # conv2 (Cout=1): nine (1,32)x(32,Lext) MXU matmuls, (1,Lext) accumulator.
    w2 = w2_ref[...]                                       # (9, 32)
    acc2 = jnp.zeros((1, Lext), dtype=jnp.float32)
    for dy in range(3):
        for dx in range(3):
            k = dy * 3 + dx
            off = P0 - Wp - 1 + dy * Wp + dx
            acc2 = acc2 + jnp.dot(w2[k:k + 1, :], h1_ref[:, off:off + Lext],
                                  preferred_element_type=jnp.float32)
    o_ref[0] = jax.nn.sigmoid(acc2 + b2_ref[...])


def depth_net_fused_pallas(updated, w1, b1, w2, b2):
    """updated: (Nt, 2, H, W) f32 -> (Nt, 1, H, W) f32 (conv/relu/conv/sigmoid)."""
    Nt, Cin, H, W = updated.shape
    assert Cin == 2
    Wp = W + 6                                   # padded row width (conv1 3+3 cols)
    L = H * Wp                                   # extended (wrap-column) output length
    Lext = _round_up(L, 128)                     # lane-dense compute / output width
    P0 = _round_up(Wp + 1, 128)                  # 128-aligned left border of h1 scratch
    L1 = _round_up(P0 + Lext + Wp + 1, 128)      # h1 scratch length
    Lp_in = _round_up(6 * Wp + 6 + Lext, 128)    # padded flattened input length

    xpad = jnp.pad(updated.astype(jnp.float32), ((0, 0), (0, 0), (3, 3), (3, 3)))
    x_flat = xpad.reshape(Nt, 2, (H + 6) * Wp)
    x_flat = jnp.pad(x_flat, ((0, 0), (0, 0), (0, Lp_in - (H + 6) * Wp)))

    # mask: kill wrap-around columns and the Lext>L tail of the flattened layout
    idx = jnp.arange(Lext, dtype=jnp.int32)
    colmask = (((idx % Wp) < W) & (idx < L)).astype(jnp.float32).reshape(1, Lext)

    # weights: w1 as (ky, out, kx*2+cin); w2 as (dy*3+dx, cin); f32 throughout
    w1r = jnp.transpose(w1, (2, 0, 3, 1)).reshape(7, 32, 14).astype(jnp.float32)
    b1r = b1.reshape(32, 1).astype(jnp.float32)
    w2r = jnp.transpose(w2.reshape(32, 3, 3), (1, 2, 0)).reshape(9, 32).astype(jnp.float32)
    b2r = b2.reshape(1, 1).astype(jnp.float32)

    out = pl.pallas_call(
        functools.partial(_depth_net_kernel, Wp=Wp, L=L, Lext=Lext, P0=P0, L1=L1),
        out_shape=jax.ShapeDtypeStruct((Nt, 1, Lext), jnp.float32),
        grid=(Nt,),
        in_specs=[
            pl.BlockSpec((1, 2, Lp_in), lambda i: (i, 0, 0)),
            pl.BlockSpec((1, Lext), lambda i: (0, 0)),
            pl.BlockSpec((7, 32, 14), lambda i: (0, 0, 0)),
            pl.BlockSpec((32, 1), lambda i: (0, 0)),
            pl.BlockSpec((9, 32), lambda i: (0, 0)),
            pl.BlockSpec((1, 1), lambda i: (0, 0)),
        ],
        out_specs=pl.BlockSpec((1, 1, Lext), lambda i: (i, 0, 0)),
        scratch_shapes=[pltpu.VMEM((32, L1), jnp.float32)],
        compiler_params=pltpu.CompilerParams(
            dimension_semantics=("parallel",),
            vmem_limit_bytes=_vmem_limit_bytes()),
    )(x_flat, colmask, w1r, b1r, w2r, b2r)

    return out[:, :, :L].reshape(Nt, 1, H, Wp)[:, :, :, :W]


# -----------------------------------------------------------------------------
# Plain-JAX glue (warp + t-matrix normalization)
# -----------------------------------------------------------------------------
def get_t_matrix(ptm, H, W, downsample_rate, discrete_ratio):
    t = ptm[:, :, :, jnp.array([0, 1]), :][:, :, :, :, jnp.array([0, 1, 3])]  # (B,L,L,2,3)
    t = t.at[..., 0, 1].multiply(H / W)
    t = t.at[..., 1, 0].multiply(W / H)
    t = t.at[..., 0, 2].set(t[..., 0, 2] / (downsample_rate * discrete_ratio * W) * 2.0)
    t = t.at[..., 1, 2].set(t[..., 1, 2] / (downsample_rate * discrete_ratio * H) * 2.0)
    return t


def warp_affine_simple(src, theta, H_out, W_out):
    """F.affine_grid + F.grid_sample (bilinear, zeros, align_corners=False)."""
    N, C, H, W = src.shape
    xs = (2.0 * jnp.arange(W_out, dtype=jnp.float32) + 1.0) / W_out - 1.0
    ys = (2.0 * jnp.arange(H_out, dtype=jnp.float32) + 1.0) / H_out - 1.0
    gx, gy = jnp.meshgrid(xs, ys)                           # (H_out, W_out) each
    base = jnp.stack([gx, gy, jnp.ones_like(gx)], axis=-1)  # (H_out, W_out, 3)
    coords = jnp.einsum("nij,hwj->nhwi", theta, base)       # (N, H_out, W_out, 2)
    x_n, y_n = coords[..., 0], coords[..., 1]
    ix = ((x_n + 1.0) * W - 1.0) / 2.0
    iy = ((y_n + 1.0) * H - 1.0) / 2.0
    ix0, iy0 = jnp.floor(ix), jnp.floor(iy)
    ix1, iy1 = ix0 + 1.0, iy0 + 1.0
    wx1, wy1 = ix - ix0, iy - iy0
    wx0, wy0 = 1.0 - wx1, 1.0 - wy1

    def gather(yy, xx):
        valid = (xx >= 0) & (xx <= W - 1) & (yy >= 0) & (yy <= H - 1)
        xi = jnp.clip(xx, 0, W - 1).astype(jnp.int32)
        yi = jnp.clip(yy, 0, H - 1).astype(jnp.int32)
        v = jax.vmap(lambda im, y, x: im[:, y, x])(src, yi, xi)   # (N, C, H_out, W_out)
        return v * valid[:, None, :, :].astype(src.dtype)

    out = (gather(iy0, ix0) * (wy0 * wx0)[:, None]
           + gather(iy0, ix1) * (wy0 * wx1)[:, None]
           + gather(iy1, ix0) * (wy1 * wx0)[:, None]
           + gather(iy1, ix1) * (wy1 * wx1)[:, None])
    return out


# -----------------------------------------------------------------------------
# Full forward pass
# -----------------------------------------------------------------------------
def colla_depth_net_forward(params, x, record_len, pairwise_t_matrix, depth_probs,
                            downsample_rate=1, discrete_ratio=1):
    Nt, C, H, W = x.shape

    # --- LayerNorm over channels per pixel (Pallas, pixels on lanes, no transposes) ---
    xn = layernorm_pallas(x.reshape(Nt, C, H * W), params["ln_g"], params["ln_b"])
    xn = xn.reshape(Nt, C, H, W)

    # --- normalized pairwise transforms ---
    tm = get_t_matrix(pairwise_t_matrix.astype(jnp.float32), H, W,
                      downsample_rate, discrete_ratio)

    # (uncertainty mask of the reference forward is computed but never used -> skipped)

    # --- per-scene warp (plain JAX glue), then ONE batched cost-volume call ---
    rl = [int(r) for r in record_len]
    Lm = max(rl)
    cum = np.cumsum(rl)
    starts = [0] + list(cum[:-1])
    feats, probs, ego_idx = [], [], []
    for b, (s, n) in enumerate(zip(starts, rl)):
        combo = jnp.concatenate([xn[s:s + n], depth_probs[s:s + n]], axis=1)  # (n, C+1, H, W)
        t_b = tm[b, :n, :n]                                                   # (n, n, 2, 3)
        warped = jax.vmap(lambda th: warp_affine_simple(combo, th, H, W))(t_b)
        if n < Lm:  # pad scene to L_max agents; padded probs are 0 -> masked out
            warped = jnp.pad(warped, ((0, 0), (0, Lm - n), (0, 0), (0, 0), (0, 0)))
        feats.append(warped[:, :, :C])
        probs.append(warped[:, :, C:])
        ego_idx.extend(range(n))
    warp_feat = jnp.concatenate(feats, axis=0).reshape(Nt, Lm, C, H * W)
    warp_prob = jnp.concatenate(probs, axis=0).reshape(Nt, Lm, 1, H * W)
    ego_idx = jnp.asarray(ego_idx, dtype=jnp.int32)

    cost_v = cost_volume_batch_pallas(warp_feat, warp_prob, ego_idx, H, W, thre=0.1)

    # --- fused depth_net: Conv2d(2,32,7,p3)+ReLU+Conv2d(32,1,3,p1)+sigmoid ---
    updated = jnp.concatenate([depth_probs, cost_v], axis=1)   # (Nt, 2, H, W)
    return depth_net_fused_pallas(updated, params["conv1_w"], params["conv1_b"],
                                  params["conv2_w"], params["conv2_b"])


# -----------------------------------------------------------------------------
# Driver
# -----------------------------------------------------------------------------
if __name__ == "__main__":
    key = jax.random.PRNGKey(0)
    ks = jax.random.split(key, 10)

    B, L = 2, 2          # 2 scenes, max 2 agents each
    record_len = [2, 2]  # -> 4 total agents
    Nt = sum(record_len)
    C, H, W = 16, 16, 16  # dim=16 LayerNorm

    # inputs
    x = jax.random.normal(ks[0], (Nt, C, H, W), dtype=jnp.float32)
    depth_probs = jax.random.uniform(ks[1], (Nt, 1, H, W), dtype=jnp.float32)
    ptm = jnp.tile(jnp.eye(4, dtype=jnp.float32), (B, L, L, 1, 1))
    ptm = ptm + 0.02 * jax.random.normal(ks[2], (B, L, L, 4, 4), dtype=jnp.float32)
    ptm = ptm.at[..., 0, 3].add(2.0 * jax.random.normal(ks[3], (B, L, L)))
    ptm = ptm.at[..., 1, 3].add(2.0 * jax.random.normal(ks[4], (B, L, L)))

    # parameters (deterministic synthetic init; shapes from the module __init__)
    params = {
        "ln_g": 1.0 + 0.1 * jax.random.normal(ks[5], (C,), dtype=jnp.float32),
        "ln_b": 0.1 * jax.random.normal(ks[6], (C,), dtype=jnp.float32),
        "conv1_w": 0.1 * jax.random.normal(ks[7], (32, 2, 7, 7), dtype=jnp.float32),
        "conv1_b": 0.1 * jax.random.normal(ks[8], (32,), dtype=jnp.float32),
        "conv2_w": 0.1 * jax.random.normal(ks[9], (1, 32, 3, 3), dtype=jnp.float32),
        "conv2_b": jnp.zeros((1,), dtype=jnp.float32),
    }

    out = colla_depth_net_forward(params, x, record_len, ptm, depth_probs,
                                  downsample_rate=1, discrete_ratio=1)
    out = jax.block_until_ready(out)
    assert out.shape == (Nt, 1, H, W)
    assert bool(jnp.all(jnp.isfinite(out)))
    print("KERNEL_OK")
</pallas_src>

<mosaic_0001>
module attributes {stable_mosaic.version = 11 : i64} {
  func.func @_layernorm_kernel(%arg0: i32, %arg1: i32, %arg2: memref<1x16x256xf32, #tpu.memory_space<vmem>>, %arg3: memref<16x1xf32, #tpu.memory_space<vmem>>, %arg4: memref<16x1xf32, #tpu.memory_space<vmem>>, %arg5: memref<1x16x256xf32, #tpu.memory_space<vmem>>) attributes {dimension_semantics = [#tpu.dimension_semantics<parallel>, #tpu.dimension_semantics<parallel>], iteration_bounds = array<i64: 4, 1>, scalar_prefetch = 0 : i64, scratch_operands = 0 : i64, tpu.core_type = #tpu.core_type<tc>, window_params = [{transform_indices = @transform_0, window_bounds = array<i64: 1, 16, 256>}, {pipeline_mode = #tpu.pipeline_mode<synchronous>, transform_indices = @transform_1, window_bounds = array<i64: 16, 1>}, {pipeline_mode = #tpu.pipeline_mode<synchronous>, transform_indices = @transform_2, window_bounds = array<i64: 16, 1>}, {transform_indices = @transform_3, window_bounds = array<i64: 1, 16, 256>}]} {
    %c0 = arith.constant 0 : index
    %c0_0 = arith.constant 0 : index
    %c0_1 = arith.constant 0 : index
    %0 = vector.load %arg2[%c0, %c0_0, %c0_1] : memref<1x16x256xf32, #tpu.memory_space<vmem>>, vector<1x16x256xf32>
    %1 = vector.shape_cast %0 : vector<1x16x256xf32> to vector<16x256xf32>
    %cst = arith.constant dense<0.000000e+00> : vector<256xf32>
    %2 = vector.multi_reduction <add>, %1, %cst [0] : vector<16x256xf32> to vector<256xf32>
    %3 = vector.shape_cast %2 : vector<256xf32> to vector<1x256xf32>
    %cst_2 = arith.constant 1.600000e+01 : f32
    %4 = vector.broadcast %cst_2 : f32 to vector<1x256xf32>
    %5 = arith.divf %3, %4 : vector<1x256xf32>
    %6 = vector.broadcast %5 : vector<1x256xf32> to vector<16x256xf32>
    %7 = arith.subf %1, %6 : vector<16x256xf32>
    %8 = arith.mulf %7, %7 : vector<16x256xf32>
    %cst_3 = arith.constant dense<0.000000e+00> : vector<256xf32>
    %9 = vector.multi_reduction <add>, %8, %cst_3 [0] : vector<16x256xf32> to vector<256xf32>
    %10 = vector.shape_cast %9 : vector<256xf32> to vector<1x256xf32>
    %cst_4 = arith.constant 1.600000e+01 : f32
    %11 = vector.broadcast %cst_4 : f32 to vector<1x256xf32>
    %12 = arith.divf %10, %11 : vector<1x256xf32>
    %13 = vector.broadcast %5 : vector<1x256xf32> to vector<16x256xf32>
    %14 = arith.subf %1, %13 : vector<16x256xf32>
    %cst_5 = arith.constant 9.99999974E-6 : f32
    %15 = vector.broadcast %cst_5 : f32 to vector<1x256xf32>
    %16 = arith.addf %12, %15 : vector<1x256xf32>
    %17 = math.rsqrt %16 : vector<1x256xf32>
    %18 = vector.broadcast %17 : vector<1x256xf32> to vector<16x256xf32>
    %19 = arith.mulf %14, %18 : vector<16x256xf32>
    %c0_6 = arith.constant 0 : index
    %c0_7 = arith.constant 0 : index
    %20 = vector.load %arg3[%c0_6, %c0_7] : memref<16x1xf32, #tpu.memory_space<vmem>>, vector<16x1xf32>
    %21 = vector.broadcast %20 : vector<16x1xf32> to vector<16x256xf32>
    %22 = arith.mulf %19, %21 : vector<16x256xf32>
    %c0_8 = arith.constant 0 : index
    %c0_9 = arith.constant 0 : index
    %23 = vector.load %arg4[%c0_8, %c0_9] : memref<16x1xf32, #tpu.memory_space<vmem>>, vector<16x1xf32>
    %24 = vector.broadcast %23 : vector<16x1xf32> to vector<16x256xf32>
    %25 = arith.addf %22, %24 : vector<16x256xf32>
    %c0_10 = arith.constant 0 : index
    %c0_11 = arith.constant 0 : index
    %c0_12 = arith.constant 0 : index
    %26 = vector.load %arg5[%c0_10, %c0_11, %c0_12] : memref<1x16x256xf32, #tpu.memory_space<vmem>>, vector<1x16x256xf32>
    %27 = vector.shape_cast %26 : vector<1x16x256xf32> to vector<16x256xf32>
    %28 = vector.shape_cast %25 : vector<16x256xf32> to vector<1x16x256xf32>
    tpu.vector_store %arg5[%c0_10, %c0_11, %c0_12], %28 {strides = array<i32>} : memref<1x16x256xf32, #tpu.memory_space<vmem>>, vector<1x16x256xf32>,
    return
  }
  func.func @transform_0(%arg0: i32, %arg1: i32) -> (i32, i32, i32) {
    %c0_i32 = arith.constant 0 : i32
    %c0_i32_0 = arith.constant 0 : i32
    return %arg0, %c0_i32, %arg1 : i32, i32, i32
  }
  func.func @transform_1(%arg0: i32, %arg1: i32) -> (i32, i32) {
    %c0_i32 = arith.constant 0 : i32
    %c0_i32_0 = arith.constant 0 : i32
    %c0_i32_1 = arith.constant 0 : i32
    return %c0_i32, %c0_i32_0 : i32, i32
  }
  func.func @transform_2(%arg0: i32, %arg1: i32) -> (i32, i32) {
    %c0_i32 = arith.constant 0 : i32
    %c0_i32_0 = arith.constant 0 : i32
    %c0_i32_1 = arith.constant 0 : i32
    return %c0_i32, %c0_i32_0 : i32, i32
  }
  func.func @transform_3(%arg0: i32, %arg1: i32) -> (i32, i32, i32) {
    %c0_i32 = arith.constant 0 : i32
    %c0_i32_0 = arith.constant 0 : i32
    return %arg0, %c0_i32, %arg1 : i32, i32, i32
  }
}

</mosaic_0001>

<bundles_post_ra>
// kernel: tpu_custom_call.1
= control target key start
LH: loop header
LB: loop body
LE: loop exit
PB: predicated region body
PF: predicated region fallthrough
CT: control target
= control target key end

     0   :  { %8 = vsyncpa [#allocation3], 0  ;;  %s788_s0 = inlined_call_operand.hbm [shape: f32[4,16,256], index: 0, kind: input, shape index: {}]   ;;  %s789_s1 = inlined_call_operand.vmem [shape: f32[16,1], index: 1, kind: input, shape index: {}]   ;;  %s790_s2 = inlined_call_operand.vmem [shape: f32[16,1], index: 2, kind: input, shape index: {}]   ;;  %s791_s3 = inlined_call_operand.hbm [shape: f32[4,16,256], index: 3, kind: output, shape index: {}]  }
   0x1   :  { %10 = vsyncpa [#allocation3 + $0x1], 0 }
   0x2   :  { %11 = vsyncpa [#allocation4], 0 }
   0x3   :  { %13 = vsyncpa [#allocation4 + $0x1], 0  ;;  %s628_s12 = smov 0   ;;  %s630_s13 = smov 0  }
   0x4   :  { %s632_s14 = smov 0   ;;  %s634_s15 = smov 0  }
   0x5   :  { %s636_s16 = smov 0   ;;  %s638_s17 = smov 0  }
   0x6 LB: > { %s401_s18 = sadd.s32 4294967295, %s599_s17   ;;  %s402_s19 = sadd.s32 4294967294, %s599_s17   ;;  %s599_s17 = sphi %s638_s17, %s19_s17   ;;  %s595_s16 = sphi %s636_s16, %s801_s16   ;;  %s591_s15 = sphi %s634_s15, %s800_s15   ;;  %s587_s14 = sphi %s632_s14, %s799_s14   ;;  %s583_s13 = sphi %s630_s13, %s798_s13   ;;  %s579_s12 = sphi %s628_s12, %s797_s12  }
   0x7   : > { %s31_s20 = sadd.s32 1, %s595_s16  ;;  %s40_s21 = sadd.s32 1, %s587_s14 }
   0x8   : > { %p33_p0 = scmp.ge.s32.totalorder %s31_s20, 4  ;;  %p47_p1 = scmp.ne.s32.totalorder %s587_s14, %s583_s13 }
   0x9   : > { %p48_p2 = scmp.eq.s32.totalorder %s599_s17, 0  ;;  %p53_p3 = scmp.ne.s32.totalorder %s583_s13, %s579_s12 }
   0xa   : > { %s803_s20 = smov (%p33_p0, %s31_s20), 0  ;;  %p54_p5 = scmp.eq.s32.totalorder %s401_s18, 0 }
   0xb   : > { %p669_p4 = por %p48_p2, %p47_p1  ;;  %s35_s23 = ssub.s32 %s595_s16, %s803_s20 }
   0xc   : > { %p121_p6 = scmp.eq.s32.totalorder %s401_s18, 3  ;;  %p38_p7 = scmp.eq.s32.totalorder %s35_s23, 0 }
   0xd   : > { %p675_p8 = por %p54_p5, %p53_p3  ;;  %p127_p10 = scmp.eq.s32.totalorder %s402_s19, 3 }
   0xe   : > { %p679_p9 = por %p121_p6, %p47_p1  ;;  %p430_p12 = scmp.lt.s32.totalorder %s599_s17, 4 }
   0xf   : > { %s684_s26 = scalar_select %p38_p7, %s587_s14, %s40_s21  }
  0x10   : > { %p686_p11 = por %p127_p10, %p53_p3  ;;  %s153_s28 = sand.u32 1, %s587_s14  }
  0x11   : > { %s405_s29 = sshll.u32 %s153_s28, 5  ;;  %s416_s30 = sshll.u32 %s595_s16, 9 }
  0x12   : > { %s165_s6 = scalar_lea.hbm %s788_s0, %s416_s30  ;;  %s157_s7 = scalar_lea.vmem [#allocation2], %s405_s29 }
  0x13   : > { %s166_s8 = sshll.u32 %s157_s7, 4  ;;  %p698_p13 = pnand %p430_p12, %p669_p4  ;;  %s167_s8 = int_to_ptr.vmem [resolvable:$true] %s166_s8 }
  0x14   : > { %p408_p0 = scmp.ge.s32.totalorder %s599_s17, 1  ;;  %s154_s10 = scalar_lea.sflag [#allocation3], %s153_s28 }
  0x15   : > { %p493_p1 = pneg %p698_p13  ;;  %s504_s11 = scalar_lea.vmem %s167_s8, 512 }
  0x16   : > { %p505_p2 = scmp.ne.s32.totalorder %s167_s8, %s504_s11  ;;  %s601_s18 = smov [#allocation2]  }
  0x17   : > { %s509_s19 = sshll.u32 %s601_s18, 4  ;;  %s510_s19 = int_to_ptr.vmem [resolvable:$false] %s509_s19 }
  0x18   : > { %p507_p3 = pnand %p505_p2, %p493_p1  ;;  %s511_s21 = scalar_lea.vmem %s510_s19, 1024 }
  0x19   : > { %p512_p6 = scmp.lt.s32.totalorder %s167_s8, %s510_s19  ;;  %p513_p7 = scmp.lt.s32.totalorder %s511_s21, %s504_s11 }
  0x1a   : > { %p508_p5 = pneg %p507_p3 }
  0x1b   : > { %p514_p10 = por %p513_p7, %p512_p6 }
  0x1d   : > { %p515_p4 = pnand %p514_p10, %p508_p5 }
  0x1f   : > { %518 = shalt.err (!%p515_p4)
}
  0x20   : > { %s602_s22 = smov 256   ;;  %s603_s23 = smov 16  }
  0x21   : > { %425 = dma.hbm_to_vmem [thread:$0]  (!%p698_p13), %s165_s6, 512, %s167_s8, %s154_s10, %s602_s22, %s602_s22, %s603_s23  }
  0x22   : > { %p174_p12 = scmp.lt.s32.totalorder %s599_s17, 5 }
  0x24   : > { %p175_p1 = pnand %p408_p0, %p174_p12 }
  0x25   : > { %s711_s28 = sand.u32 (!%p175_p1), 1, %s583_s13  }
  0x26   : > { %178 = sbr.rel (%p175_p1) target bundleno = 192 (0xc0), region = 32  ;;  %s409_s29 = sshll.u32 (!%p175_p1), %s711_s28, 5 }
  0x27   : > { %s181_s30 = scalar_lea.sflag (!%p175_p1), [#allocation3], %s711_s28  ;;  %s184_s4 = scalar_lea.vmem (!%p175_p1), [#allocation2], %s409_s29 }
  0x2b   : > { %570 = dma.done.wait (%p675_p8), %s181_s30, 512  }
  0x2c   : > { %572 = vsyncadd (%p675_p8), %s181_s30, 4294966784  ;;  %v604_v0 = vmov 0   ;;  %v278_v1 = vld [vmem:[%s790_s2] sm:$0xff]  ;;  %v279_v3 = vld [vmem:[%s790_s2 + $0x8] sm:$0xff]  ;;  %s206_s18 = scalar_lea.vmem [#allocation5], %s409_s29  ;;  %s417_s21 = sshll.u32 %s591_s15, 9 }
  0x2d   : > { %486 = vset.pattern.permute.xlu1 %v604_v0  ;;  %485 = vset.pattern.permute.xlu0 %v604_v0  ;;  %v262_v2 = vld [vmem:[%s789_s1] sm:$0xff]  ;;  %v263_v4 = vld [vmem:[%s789_s1 + $0x8] sm:$0xff]  ;;  %v211_v6 = vld [vmem:[%s184_s4 + $0x10] sm:$0xff]  ;;  %s314_s19 = sshll.u32 %s206_s18, 4  ;;  %s741_s29 = scalar_lea.hbm %s791_s3, %s417_s21  ;;  %s736_s19 = int_to_ptr.vmem [resolvable:$true] %s314_s19 }
  0x2e   : > { %282 = vperm.xlu1 %486, %v278_v1   ;;  %266 = vperm.xlu0 %485, %v262_v2   ;;  %v209_v5 = vld [vmem:[%s184_s4] sm:$0xff]  ;;  %v210_v7 = vld [vmem:[%s184_s4 + $0x8] sm:$0xff]  ;;  %v212_v8 = vld [vmem:[%s184_s4 + $0x18] sm:$0xff]  ;;  %s299_s15 = scalar_lea.sflag [#allocation4], %s711_s28  ;;  %s519_s30 = scalar_lea.vmem %s736_s19, 512 }
  0x2f   : > { %v213_v9 = vadd.f32 %v211_v6, %v209_v5  ;;  %v220_v10 = vadd.f32 %v212_v8, %v210_v7  ;;  %p520_p8 = scmp.ne.s32.totalorder %s736_s19, %s519_s30  ;;  %s605_s4 = smov [#allocation5]  }
  0x30   : > { %s523_s5 = sshll.u32 %s605_s4, 4  ;;  %s524_s5 = int_to_ptr.vmem [resolvable:$false] %s523_s5 }
  0x31   : > { %v214_v11 = vrot.slane %v213_v9, 4  ;;  %v221_v12 = vrot.slane %v220_v10, 4  ;;  %p521_p13 = pnand %p520_p8, %p679_p9  ;;  %s525_s6 = scalar_lea.vmem %s524_s5, 1024 }
  0x32   : > { %287 = vperm.xlu1 %486, %v279_v3   ;;  %271 = vperm.xlu0 %485, %v263_v4   ;;  %p526_p2 = scmp.lt.s32.totalorder %s736_s19, %s524_s5  ;;  %p527_p3 = scmp.lt.s32.totalorder %s525_s6, %s519_s30 }
  0x33   : > { %v215_v13 = vadd.f32 %v214_v11, %v213_v9  ;;  %v222_v14 = vadd.f32 %v221_v12, %v220_v10  ;;  %p522_p0 = pneg %p521_p13 }
  0x34   : > { %p528_p5 = por %p527_p3, %p526_p2 }
  0x35   : > { %v216_v15 = vrot.slane %v215_v13, 2  ;;  %v223_v16 = vrot.slane %v222_v14, 2 }
  0x36   : > { %p529_p6 = pnand %p528_p5, %p522_p0 }
  0x37   : > { %v217_v17 = vadd.f32 %v216_v15, %v215_v13  ;;  %v224_v18 = vadd.f32 %v223_v16, %v222_v14 }
  0x39   : > { %v218_v19 = vrot.slane %v217_v17, 1  ;;  %v225_v20 = vrot.slane %v224_v18, 1 }
  0x3b   : > { %v219_v21 = vadd.f32 %v218_v19, %v217_v17  ;;  %v226_v22 = vadd.f32 %v225_v20, %v224_v18 }
  0x3d   : > { %v228_v23 = vmul.f32 0.0625, %v219_v21  ;;  %v229_v24 = vmul.f32 0.0625, %v226_v22 }
  0x3f   : > { %v230_v25 = vsub.f32 %v209_v5, %v228_v23  ;;  %v232_v26 = vsub.f32 %v211_v6, %v228_v23  ;;  %v231_v27 = vsub.f32 %v210_v7, %v229_v24  ;;  %v233_v28 = vsub.f32 %v212_v8, %v229_v24 }
  0x41   : > { %v234_v29 = vmul.f32 %v230_v25, %v230_v25  ;;  %v236_v30 = vmul.f32 %v232_v26, %v232_v26  ;;  %v235_v31 = vmul.f32 %v231_v27, %v231_v27  ;;  %v237_v32 = vmul.f32 %v233_v28, %v233_v28 }
  0x43   : > { %v238_v33 = vadd.f32 %v236_v30, %v234_v29  ;;  %v245_v34 = vadd.f32 %v237_v32, %v235_v31 }
  0x45   : > { %v239_v35 = vrot.slane %v238_v33, 4  ;;  %v246_v36 = vrot.slane %v245_v34, 4 }
  0x47   : > { %v240_v37 = vadd.f32 %v239_v35, %v238_v33  ;;  %v247_v38 = vadd.f32 %v246_v36, %v245_v34 }
  0x49   : > { %v241_v39 = vrot.slane %v240_v37, 2  ;;  %v248_v40 = vrot.slane %v247_v38, 2 }
  0x4b   : > { %v242_v41 = vadd.f32 %v241_v39, %v240_v37  ;;  %v249_v42 = vadd.f32 %v248_v40, %v247_v38 }
  0x4d   : > { %v243_v43 = vrot.slane %v242_v41, 1  ;;  %v250_v44 = vrot.slane %v249_v42, 1 }
  0x4f   : > { %v244_v45 = vadd.f32 %v243_v43, %v242_v41  ;;  %v251_v46 = vadd.f32 %v250_v44, %v249_v42 }
  0x51   : > { %v252_v47 = vmul.f32 0.0625, %v244_v45  ;;  %v253_v48 = vmul.f32 0.0625, %v251_v46 }
  0x53   : > { %v254_v49 = vadd.f32 1e-05, %v252_v47  ;;  %v255_v50 = vadd.f32 1e-05, %v253_v48 }
  0x55   : > { %487 = vrsqrt.f32 %v254_v49 }
  0x56   : > { %489 = vrsqrt.f32 %v255_v50 }
  0x62   : > { %v488_v51 = vpop.eup %487 }
  0x63   : > { %v490_v52 = vpop.eup %489  ;;  %v258_v53 = vmul.f32 %v488_v51, %v230_v25  ;;  %v260_v59 = vmul.f32 %v488_v51, %v232_v26 }
  0x64   : > { %v259_v54 = vmul.f32 %v490_v52, %v231_v27  ;;  %v261_v60 = vmul.f32 %v490_v52, %v233_v28 }
  0xa9   : > { %v283_v55 = vpop.permute.xlu1 %282  ;;  %v267_v56 = vpop.permute.xlu0 %266 }
  0xaa   : > { %v274_v57 = vmul.f32 %v267_v56, %v258_v53  ;;  %v275_v58 = vmul.f32 %v267_v56, %v259_v54 }
  0xac   : > { %v290_v61 = vadd.f32 %v283_v55, %v274_v57  ;;  %v291_v62 = vadd.f32 %v283_v55, %v275_v58 }
  0xad   : > { %v272_v63 = vpop.permute.xlu0 %271  ;;  %v288_v2 = vpop.permute.xlu1 %287 }
  0xae   : > { %294 = vst [vmem:[%s206_s18] sm:$0xff] %v290_v61  ;;  %295 = vst [vmem:[%s206_s18 + $0x8] sm:$0xff] %v291_v62  ;;  %v276_v0 = vmul.f32 %v272_v63, %v260_v59  ;;  %v277_v1 = vmul.f32 %v272_v63, %v261_v60 }
  0xb0   : > { %v292_v3 = vadd.f32 %v288_v2, %v276_v0  ;;  %v293_v4 = vadd.f32 %v288_v2, %v277_v1 }
  0xb2   : > { %296 = vst [vmem:[%s206_s18 + $0x10] sm:$0xff] %v292_v3  ;;  %297 = vst [vmem:[%s206_s18 + $0x18] sm:$0xff] %v293_v4 }
  0xb3   : > { %532 = shalt.err (!%p529_p6)
}
  0xb4   : > { %s533_s7 = scalar_lea.hbm %s741_s29, 512  ;;  %s537_s10 = scalar_lea.hbm %s791_s3, 2048 }
  0xb5   : > { %p534_p7 = scmp.ne.s32.totalorder %s741_s29, %s533_s7  ;;  %p538_p12 = scmp.lt.s32.totalorder %s741_s29, %s791_s3 }
  0xb6   : > { %p539_p1 = scmp.lt.s32.totalorder %s537_s10, %s533_s7 }
  0xb7   : > { %p535_p10 = pnand %p534_p7, %p679_p9 }
  0xb8   : > { %p540_p8 = por %p539_p1, %p538_p12 }
  0xb9   : > { %p536_p4 = pneg %p535_p10 }
  0xbb   : > { %p541_p13 = pnand %p540_p8, %p536_p4 }
  0xbd   : > { %544 = shalt.err (!%p541_p13)
}
  0xbe   : > { %s606_s18 = smov 256   ;;  %s607_s21 = smov 16  }
  0xbf   : > { %420 = dma.vmem_to_hbm [thread:$0]  (%p679_p9), %s736_s19, 512, %s741_s29, %s299_s15, %s606_s18, %s606_s18, %s607_s21  }
  0xc0 PF: > { %p431_p0 = scmp.ge.s32.totalorder %s599_s17, 2  ;;  %s329_s22 = sand.u32 1, %s579_s12  }
  0xc1   : > { %s330_s23 = scalar_lea.sflag [#allocation4], %s329_s22 }
  0xc2   : > { %p427_p2 = pnand %p431_p0, %p686_p11 }
  0xc4   : > { %p428_p3 = pneg %p427_p2 }
  0xc6   : > { %574 = dma.done.wait (%p428_p3), %s330_s23, 512  }
  0xc7   : > { %576 = vsyncadd (%p428_p3), %s330_s23, 4294966784  ;;  %s19_s17 = sadd.s32 1, %s599_s17   ;;  %s797_s12 = smov %s583_s13 }
  0xc8   : > { %p16_p5 = scmp.ge.s32.totalorder %s19_s17, 6   ;;  %s798_s13 = smov %s587_s14 }
  0xc9   : > { %s799_s14 = smov %s684_s26  ;;  %s800_s15 = smov %s595_s16 }
  0xca   : > { %s801_s16 = smov %s803_s20  ;;  %18 = sbr.rel (!%p16_p5) target bundleno = 6 (0x6), region = 77 }
  0xcf   :  { %335 = vsyncpa [#allocation3], 1 }
  0xd0   :  { %337 = vsyncpa [#allocation3 + $0x1], 1 }
  0xd1   :  { %338 = vsyncpa [#allocation4], 1 }
  0xd2   :  { %340 = vsyncpa [#allocation4 + $0x1], 1 }

</bundles_post_ra>
